<compile_context>
chip_gen: v6e
topology: v6e:2x2x1
jax: 0.10.0
libtpu: 0.0.40
codegen_flags: <defaults>
</compile_context>

<pallas_src>
import jax
import jax.numpy as jnp
from jax.experimental import pallas as pl
from jax.experimental.pallas import tpu as pltpu


def cnn_kernel(emb_ref, wc_ref, mask_ref, bc_ref, pw_ref, pb_ref, out_ref):
    emb = emb_ref[...]                                   # (TB, S_time, E) bf16
    TB, S_time, E = emb.shape
    KE, F3 = wc_ref.shape                                # (K_max*E, 3F)
    K_max = KE // E
    L_pad = S_time - K_max + 1                           # multiple of 8 (wrapper guarantees)

    # Shared im2col over all window sizes -> one wide-contraction MXU matmul.
    win = jnp.concatenate([emb[:, k:k + L_pad, :] for k in range(K_max)], axis=-1)
    acc = jnp.dot(win.reshape(TB * L_pad, KE), wc_ref[...],
                  preferred_element_type=jnp.float32)    # (TB*L_pad, 3F) f32
    # -inf mask on time positions where a given window runs off the real sequence.
    acc = acc.reshape(TB, L_pad, F3) + mask_ref[...][None]
    # Conv bias after the time-max (equivalent: bias is time-invariant), then ReLU.
    h = jnp.maximum(jnp.max(acc, axis=1) + bc_ref[...], 0.0)           # (TB, 3F) f32
    # Single f32 projection matmul into the lane-dense padded tag dim; dropout = identity.
    out = jnp.dot(h, pw_ref[...], preferred_element_type=jnp.float32) + pb_ref[...]
    out_ref[...] = out.astype(out_ref.dtype)


def cnn_forward(words, params, ntags, *, tile_b=512):
    """Forward pass matching CNNclass.forward (eval mode, batched int32 word ids)."""
    E = params['emb'].shape[1]
    F = params['w1'].shape[-1]
    Ks = [params[f'w{i}'].shape[0] for i in (1, 2, 3)]
    K_max, K_min = max(Ks), min(Ks)

    B, S = words.shape
    assert S >= K_max, "sequence length must be >= the largest conv window"

    # TODO(synk): fuse the embedding gather into the kernel (scalar-prefetch word ids +
    # VMEM-resident / DMA row gather of the bf16 table) to delete the (B,S,E) HBM round
    # trip; for now XLA's native gather feeds the kernel in bf16.
    emb = jnp.take(params['emb'].astype(jnp.bfloat16), words, axis=0)   # (B, S, E) bf16

    # Shared-im2col geometry: L_pad time positions, rounded to a multiple of 8 so the
    # in-kernel (TB, L_pad, K*E) <-> (TB*L_pad, K*E) reshapes stay sublane-aligned.
    L = S - K_min + 1
    L_pad = ((L + 7) // 8) * 8
    S_time = L_pad + K_max - 1

    # Batch tiling: large tiles, but >=2 grid steps when the batch allows so both of
    # v7x's TensorCores get work; tile is a multiple of 8 (sublane).
    num_tiles = max(1, -(-B // tile_b))
    if num_tiles == 1 and B >= 16:
        num_tiles = 2
    tb = ((-(-B // num_tiles) + 7) // 8) * 8
    b_pad = tb * num_tiles

    emb = jnp.pad(emb, ((0, b_pad - B), (0, S_time - S), (0, 0)))       # zero padding

    # Lane-dense output width (unmasked vst; sliced back in the wrapper).
    nt_pad = ((ntags + 127) // 128) * 128

    # Fused conv weight: taps zero-padded to K_max, per-window blocks stacked on columns.
    w_blocks = []
    for i, K in zip((1, 2, 3), Ks):
        w = params[f'w{i}'].reshape(K * E, F)                           # (K*E, F)
        w_blocks.append(jnp.pad(w, ((0, (K_max - K) * E), (0, 0))))
    w_fused = jnp.concatenate(w_blocks, axis=1).astype(jnp.bfloat16)    # (K_max*E, 3F)

    bconv = jnp.concatenate([params[f'b{i}'] for i in (1, 2, 3)],
                            axis=1).astype(jnp.float32)                 # (1, 3F)

    # Additive -inf mask: a window of size K is only valid at positions t < S - K + 1.
    t = jnp.arange(L_pad)[:, None]
    mask = jnp.concatenate(
        [jnp.broadcast_to(jnp.where(t < (S - K + 1), 0.0, -jnp.inf), (L_pad, F))
         for K in Ks], axis=1).astype(jnp.float32)                      # (L_pad, 3F)

    pw = jnp.pad(params['pw'], ((0, 0), (0, nt_pad - ntags))).astype(jnp.float32)
    pb = jnp.pad(params['pb'], ((0, 0), (0, nt_pad - ntags))).astype(jnp.float32)

    out = pl.pallas_call(
        cnn_kernel,
        out_shape=jax.ShapeDtypeStruct((b_pad, nt_pad), jnp.bfloat16),
        grid=(num_tiles,),
        in_specs=[
            pl.BlockSpec((tb, S_time, E), lambda b: (b, 0, 0)),   # streamed batch tiles
            pl.BlockSpec(w_fused.shape, lambda b: (0, 0)),        # weights stay resident
            pl.BlockSpec(mask.shape, lambda b: (0, 0)),
            pl.BlockSpec(bconv.shape, lambda b: (0, 0)),
            pl.BlockSpec(pw.shape, lambda b: (0, 0)),
            pl.BlockSpec(pb.shape, lambda b: (0, 0)),
        ],
        out_specs=pl.BlockSpec((tb, nt_pad), lambda b: (b, 0)),
        compiler_params=pltpu.CompilerParams(
            dimension_semantics=("parallel",),           # shard batch tiles across TCs (v7x)
            vmem_limit_bytes=48 * 1024 * 1024),          # > v5e 16MiB default, < v7x 64MiB
    )(emb, w_fused, mask, bconv, pw, pb)

    return out[:B, :ntags].astype(jnp.float32)


def reference_forward(words, params):
    # Pure-JAX f32 reference mirroring the PyTorch forward (eval mode).
    emb = jnp.take(params['emb'], words, axis=0)         # (B, S, E) f32
    B, S, E = emb.shape

    def conv_max(w, b):
        K, _, F = w.shape
        L = S - K + 1
        acc = jnp.zeros((B, L, F), jnp.float32)
        for k in range(K):
            acc = acc + jnp.einsum('ble,ef->blf', emb[:, k:k + L, :], w[k])
        acc = acc + b.reshape(1, 1, F)
        return jnp.max(acc, axis=1)

    h = jnp.concatenate([conv_max(params['w1'], params['b1']),
                         conv_max(params['w2'], params['b2']),
                         conv_max(params['w3'], params['b3'])], axis=1)
    h = jnp.maximum(h, 0.0)
    return jnp.dot(h, params['pw']) + params['pb']


def init_params(key, nwords, emb_size, num_filters, window_sizes, ntags):
    keys = jax.random.split(key, 9)
    params = {}
    # Embedding: uniform(-0.25, 0.25) as in the module.
    params['emb'] = jax.random.uniform(
        keys[0], (nwords, emb_size), jnp.float32, minval=-0.25, maxval=0.25)
    # Conv weights stored as (K, E, F) (transposed from PyTorch's (F, E, K)).
    for i, (k, ks) in enumerate(zip(keys[1:4], window_sizes), start=1):
        bound = 1.0 / jnp.sqrt(emb_size * ks)
        params[f'w{i}'] = jax.random.uniform(
            k, (ks, emb_size, num_filters), jnp.float32, minval=-bound, maxval=bound)
        params[f'b{i}'] = jax.random.uniform(
            keys[3 + i], (1, num_filters), jnp.float32, minval=-bound, maxval=bound)
    # Projection: xavier-uniform weight (stored as (3F, ntags)), small bias.
    fan_in, fan_out = 3 * num_filters, ntags
    xav = jnp.sqrt(6.0 / (fan_in + fan_out))
    params['pw'] = jax.random.uniform(
        keys[7], (fan_in, fan_out), jnp.float32, minval=-xav, maxval=xav)
    params['pb'] = jax.random.uniform(
        keys[8], (1, fan_out), jnp.float32, minval=-0.01, maxval=0.01)
    return params


if __name__ == "__main__":
    nwords, emb_size, num_filters = 100, 32, 16
    window_sizes = (2, 3, 4)
    ntags = 8
    seq = 16

    key = jax.random.PRNGKey(0)
    pkey, wkey, wkey2 = jax.random.split(key, 3)
    params = init_params(pkey, nwords, emb_size, num_filters, window_sizes, ntags)

    # Small batch (single grid step).
    words = jax.random.randint(wkey, (2, seq), 0, nwords, dtype=jnp.int32)
    out = jax.block_until_ready(cnn_forward(words, params, ntags))
    ref = reference_forward(words, params)
    assert out.shape == (2, ntags)
    assert jnp.allclose(out, ref, atol=3e-2, rtol=3e-2), (
        f"max abs diff {jnp.max(jnp.abs(out - ref))}")

    # Larger batch exercising the multi-tile (>=2 grid steps, both-TC) path.
    words2 = jax.random.randint(wkey2, (32, seq), 0, nwords, dtype=jnp.int32)
    out2 = jax.block_until_ready(cnn_forward(words2, params, ntags))
    ref2 = reference_forward(words2, params)
    assert out2.shape == (32, ntags)
    assert jnp.allclose(out2, ref2, atol=3e-2, rtol=3e-2), (
        f"max abs diff {jnp.max(jnp.abs(out2 - ref2))}")

    print("KERNEL_OK")
</pallas_src>

<mosaic_0001>
module attributes {stable_mosaic.version = 11 : i64} {
  func.func @cnn_kernel(%arg0: i32, %arg1: memref<8x19x32xbf16, #tpu.memory_space<vmem>>, %arg2: memref<128x48xbf16, #tpu.memory_space<vmem>>, %arg3: memref<16x48xf32, #tpu.memory_space<vmem>>, %arg4: memref<1x48xf32, #tpu.memory_space<vmem>>, %arg5: memref<48x128xf32, #tpu.memory_space<vmem>>, %arg6: memref<1x128xf32, #tpu.memory_space<vmem>>, %arg7: memref<8x128xbf16, #tpu.memory_space<vmem>>) attributes {dimension_semantics = [#tpu.dimension_semantics<parallel>], iteration_bounds = array<i64: 1>, scalar_prefetch = 0 : i64, scratch_operands = 0 : i64, tpu.core_type = #tpu.core_type<tc>, window_params = [{transform_indices = @transform_0, window_bounds = array<i64: 8, 19, 32>}, {pipeline_mode = #tpu.pipeline_mode<synchronous>, transform_indices = @transform_1, window_bounds = array<i64: 128, 48>}, {pipeline_mode = #tpu.pipeline_mode<synchronous>, transform_indices = @transform_2, window_bounds = array<i64: 16, 48>}, {pipeline_mode = #tpu.pipeline_mode<synchronous>, transform_indices = @transform_3, window_bounds = array<i64: 1, 48>}, {pipeline_mode = #tpu.pipeline_mode<synchronous>, transform_indices = @transform_4, window_bounds = array<i64: 48, 128>}, {pipeline_mode = #tpu.pipeline_mode<synchronous>, transform_indices = @transform_5, window_bounds = array<i64: 1, 128>}, {transform_indices = @transform_6, window_bounds = array<i64: 8, 128>}]} {
    %c0 = arith.constant 0 : index
    %c0_0 = arith.constant 0 : index
    %c0_1 = arith.constant 0 : index
    %0 = vector.load %arg1[%c0, %c0_0, %c0_1] : memref<8x19x32xbf16, #tpu.memory_space<vmem>>, vector<8x19x32xbf16>
    %1 = vector.extract_strided_slice %0 {offsets = [0, 0, 0], sizes = [8, 16, 32], strides = [1, 1, 1]} : vector<8x19x32xbf16> to vector<8x16x32xbf16>
    %2 = vector.extract_strided_slice %0 {offsets = [0, 1, 0], sizes = [8, 16, 32], strides = [1, 1, 1]} : vector<8x19x32xbf16> to vector<8x16x32xbf16>
    %3 = vector.extract_strided_slice %0 {offsets = [0, 2, 0], sizes = [8, 16, 32], strides = [1, 1, 1]} : vector<8x19x32xbf16> to vector<8x16x32xbf16>
    %4 = vector.extract_strided_slice %0 {offsets = [0, 3, 0], sizes = [8, 16, 32], strides = [1, 1, 1]} : vector<8x19x32xbf16> to vector<8x16x32xbf16>
    %5 = tpu.concatenate %1, %2, %3, %4 in 2 : vector<8x16x32xbf16>, vector<8x16x32xbf16>, vector<8x16x32xbf16>, vector<8x16x32xbf16> -> vector<8x16x128xbf16>
    %6 = vector.shape_cast %5 : vector<8x16x128xbf16> to vector<128x128xbf16>
    %c0_2 = arith.constant 0 : index
    %c0_3 = arith.constant 0 : index
    %7 = vector.load %arg2[%c0_2, %c0_3] : memref<128x48xbf16, #tpu.memory_space<vmem>>, vector<128x48xbf16>
    %cst = arith.constant dense<0.000000e+00> : vector<128x48xf32>
    %8 = tpu.matmul %6, %7, %cst {dimension_numbers = #tpu.dot_dimension_numbers<[1], [0], [0], [1], [0, 0, 1, 1], [], []>} : vector<128x128xbf16>, vector<128x48xbf16>, vector<128x48xf32> -> vector<128x48xf32>
    %9 = vector.shape_cast %8 : vector<128x48xf32> to vector<8x16x48xf32>
    %c0_4 = arith.constant 0 : index
    %c0_5 = arith.constant 0 : index
    %10 = vector.load %arg3[%c0_4, %c0_5] : memref<16x48xf32, #tpu.memory_space<vmem>>, vector<16x48xf32>
    %11 = vector.shape_cast %10 : vector<16x48xf32> to vector<1x16x48xf32>
    %12 = vector.broadcast %11 : vector<1x16x48xf32> to vector<8x16x48xf32>
    %13 = arith.addf %9, %12 : vector<8x16x48xf32>
    %cst_6 = arith.constant dense<0xFF800000> : vector<8x48xf32>
    %14 = vector.multi_reduction <maximumf>, %13, %cst_6 [1] : vector<8x16x48xf32> to vector<8x48xf32>
    %c0_7 = arith.constant 0 : index
    %c0_8 = arith.constant 0 : index
    %15 = vector.load %arg4[%c0_7, %c0_8] : memref<1x48xf32, #tpu.memory_space<vmem>>, vector<1x48xf32>
    %16 = vector.broadcast %15 : vector<1x48xf32> to vector<8x48xf32>
    %17 = arith.addf %14, %16 : vector<8x48xf32>
    %cst_9 = arith.constant 0.000000e+00 : f32
    %18 = vector.broadcast %cst_9 : f32 to vector<8x48xf32>
    %19 = arith.maximumf %17, %18 : vector<8x48xf32>
    %c0_10 = arith.constant 0 : index
    %c0_11 = arith.constant 0 : index
    %20 = vector.load %arg5[%c0_10, %c0_11] : memref<48x128xf32, #tpu.memory_space<vmem>>, vector<48x128xf32>
    %cst_12 = arith.constant dense<0.000000e+00> : vector<8x128xf32>
    %21 = tpu.matmul %19, %20, %cst_12 {dimension_numbers = #tpu.dot_dimension_numbers<[1], [0], [0], [1], [0, 0, 1, 1], [], []>} : vector<8x48xf32>, vector<48x128xf32>, vector<8x128xf32> -> vector<8x128xf32>
    %c0_13 = arith.constant 0 : index
    %c0_14 = arith.constant 0 : index
    %22 = vector.load %arg6[%c0_13, %c0_14] : memref<1x128xf32, #tpu.memory_space<vmem>>, vector<1x128xf32>
    %23 = vector.broadcast %22 : vector<1x128xf32> to vector<8x128xf32>
    %24 = arith.addf %21, %23 : vector<8x128xf32>
    %25 = arith.truncf %24 : vector<8x128xf32> to vector<8x128xbf16>
    %c0_15 = arith.constant 0 : index
    %c0_16 = arith.constant 0 : index
    %26 = vector.load %arg7[%c0_15, %c0_16] : memref<8x128xbf16, #tpu.memory_space<vmem>>, vector<8x128xbf16>
    tpu.vector_store %arg7[%c0_15, %c0_16], %25 {strides = array<i32>} : memref<8x128xbf16, #tpu.memory_space<vmem>>, vector<8x128xbf16>,
    return
  }
  func.func @transform_0(%arg0: i32) -> (i32, i32, i32) {
    %c0_i32 = arith.constant 0 : i32
    %c0_i32_0 = arith.constant 0 : i32
    %c0_i32_1 = arith.constant 0 : i32
    return %arg0, %c0_i32, %c0_i32_0 : i32, i32, i32
  }
  func.func @transform_1(%arg0: i32) -> (i32, i32) {
    %c0_i32 = arith.constant 0 : i32
    %c0_i32_0 = arith.constant 0 : i32
    %c0_i32_1 = arith.constant 0 : i32
    return %c0_i32, %c0_i32_0 : i32, i32
  }
  func.func @transform_2(%arg0: i32) -> (i32, i32) {
    %c0_i32 = arith.constant 0 : i32
    %c0_i32_0 = arith.constant 0 : i32
    %c0_i32_1 = arith.constant 0 : i32
    return %c0_i32, %c0_i32_0 : i32, i32
  }
  func.func @transform_3(%arg0: i32) -> (i32, i32) {
    %c0_i32 = arith.constant 0 : i32
    %c0_i32_0 = arith.constant 0 : i32
    %c0_i32_1 = arith.constant 0 : i32
    return %c0_i32, %c0_i32_0 : i32, i32
  }
  func.func @transform_4(%arg0: i32) -> (i32, i32) {
    %c0_i32 = arith.constant 0 : i32
    %c0_i32_0 = arith.constant 0 : i32
    %c0_i32_1 = arith.constant 0 : i32
    return %c0_i32, %c0_i32_0 : i32, i32
  }
  func.func @transform_5(%arg0: i32) -> (i32, i32) {
    %c0_i32 = arith.constant 0 : i32
    %c0_i32_0 = arith.constant 0 : i32
    %c0_i32_1 = arith.constant 0 : i32
    return %c0_i32, %c0_i32_0 : i32, i32
  }
  func.func @transform_6(%arg0: i32) -> (i32, i32) {
    %c0_i32 = arith.constant 0 : i32
    %c0_i32_0 = arith.constant 0 : i32
    return %arg0, %c0_i32 : i32, i32
  }
}

</mosaic_0001>

<bundles_post_ra>
// kernel: tpu_custom_call.1
= control target key start
LH: loop header
LB: loop body
LE: loop exit
PB: predicated region body
PF: predicated region fallthrough
CT: control target
= control target key end

     0   :  { %vm226_vm0 = vcmask 1046528   ;;  %vm113_vm1 = vsmask.f32 7424  ;;  %s985_s29 = smov 64   ;;  %vm267_vm2 = vsmask.f32 6400  ;;  %s1342_s0 = inlined_call_operand.vmem [shape: bf16[8,19,32], index: 0, kind: input, shape index: {}]   ;;  %s1343_s1 = inlined_call_operand.vmem [shape: bf16[128,48], index: 1, kind: input, shape index: {}]   ;;  %s1344_s2 = inlined_call_operand.vmem [shape: f32[16,48], index: 2, kind: input, shape index: {}]   ;;  %s1345_s3 = inlined_call_operand.vmem [shape: f32[1,48], index: 3, kind: input, shape index: {}]   ;;  %s1346_s4 = inlined_call_operand.vmem [shape: f32[48,128], index: 4, kind: input, shape index: {}]   ;;  %s1347_s5 = inlined_call_operand.vmem [shape: f32[1,128], index: 5, kind: input, shape index: {}]   ;;  %s1348_s6 = inlined_call_operand.hbm [shape: bf16[8,128], index: 6, kind: output, shape index: {}]  }
   0x1   :  { %v1029_v0 = vld [vmem:[%s1342_s0] sm:$0xff]   ;;  %v940_v1 = vld [vmem:[%s1342_s0 + $0x8] ss:$0 sps:$4 sm:$0x33]   ;;  %v1038_v4 = vld [vmem:[%s1342_s0 + $0xc] sm:$0xff]   ;;  %s986_s12 = smov 32  }
   0x2   :  { %v227_v2 = vrot.slane %v1029_v0, 1  ;;  %v228_v3 = vrot.slane %v940_v1, 1  ;;  %v942_v5 = vld [vmem:[%s1342_s0 + $0x14] ss:$0 sps:$4 sm:$0x33]   ;;  %v115_v6 = vshrl.u32 %v1029_v0, 16 }
   0x3   :  { %v117_v7 = vshll.u32 %v1029_v0, 16  ;;  %v122_v8 = vshll.u32 %v940_v1, 16  ;;  %v230_v10 = vrot.slane %v1038_v4, 1  ;;  %v231_v11 = vrot.slane %v942_v5, 1  ;;  %v1054_v24 = vld [vmem:[%s1342_s0 + $0x24] sm:$0xff]   ;;  %v1065_v33 = vld [vmem:[%s1342_s0 + $0x18] sm:$0xff]  }
   0x4   :  { %v229_v9 = vsel %vm226_vm0, %v227_v2, %v228_v3  ;;  %v127_v12 = vshrl.u32 %v1038_v4, 16  ;;  %v129_v15 = vshll.u32 %v1038_v4, 16  ;;  %v134_v16 = vshll.u32 %v942_v5, 16  ;;  %v944_v27 = vld [vmem:[%s1342_s0 + $0x2c] ss:$0 sps:$4 sm:$0x33]  }
   0x5   :  { %251 = vrot.lane.b32.xlu1 %v229_v9, %s985_s29  ;;  %v119_v13 = vrot.slane %v117_v7, 1  ;;  %v124_v14 = vrot.slane %v122_v8, 1  ;;  %v232_v17 = vsel %vm226_vm0, %v230_v10, %v231_v11  ;;  %v280_v19 = vshrl.u32 %v942_v5, 16  ;;  %v946_v38 = vld [vmem:[%s1342_s0 + $0x20] ss:$0 sps:$4 sm:$0x33]  }
   0x6   :  { %v277_v18 = vrot.slane %v127_v12, 1  ;;  %v278_v21 = vrot.slane %v129_v15, 2  ;;  %v283_v22 = vrot.slane %v134_v16, 2  ;;  %v131_v23 = vrot.slane %v129_v15, 1  ;;  %v1078_v47 = vld [vmem:[%s1342_s0 + $0x3c] sm:$0xff]   ;;  %s987_s17 = smov 96  }
   0x7   :  { %v120_v20 = vor.u32 %v119_v13, %v115_v6  ;;  %v282_v25 = vrot.slane %v280_v19, 1  ;;  %v136_v26 = vrot.slane %v134_v16, 1  ;;  %v268_v28 = vrot.slane %v115_v6, 1  ;;  %v1087_v56 = vld [vmem:[%s1342_s0 + $0x44] ss:$0 sps:$4 sm:$0x33]  }
   0x8   :  { %v279_v30 = vor.u32 %v278_v21, %v277_v18  ;;  %v132_v31 = vor.u32 %v131_v23, %v127_v12  ;;  %v151_v32 = vshrl.u32 %v1054_v24, 16  ;;  %v153_v35 = vshll.u32 %v1054_v24, 16  ;;  %v1094_v2 = vld [vmem:[%s1342_s0 + $0x48] sm:$0xff]   ;;  %v1099_v3 = vld [vmem:[%s1342_s0 + $0x50] ss:$0 sps:$4 sm:$0x33]  }
   0x9   :  { %253 = vrot.lane.b32.xlu1 %v232_v17, %s985_s29  ;;  %v125_v29 = vsel %vm113_vm1, %v120_v20, %v124_v14  ;;  %v284_v34 = vor.u32 %v283_v22, %v282_v25  ;;  %v158_v36 = vshll.u32 %v944_v27, 16  ;;  %v269_v37 = vrot.slane %v117_v7, 2  ;;  %v1112_v17 = vld [vmem:[%s1342_s0 + $0x30] sm:$0xff]   ;;  %v1117_v18 = vld [vmem:[%s1342_s0 + $0x38] ss:$0 sps:$4 sm:$0x33]  }
   0xa   :  { %210 = vrot.lane.b32.xlu0 %v125_v29, %s986_s12  ;;  %v137_v39 = vsel %vm113_vm1, %v132_v31, %v136_v26  ;;  %v271_v40 = vshrl.u32 %v940_v1, 16  ;;  %v274_v41 = vrot.slane %v122_v8, 2  ;;  %v236_v42 = vrot.slane %v1054_v24, 1 }
   0xb   :  { %v285_v43 = vsel %vm267_vm2, %v279_v30, %v284_v34  ;;  %v155_v44 = vrot.slane %v153_v35, 1  ;;  %v160_v45 = vrot.slane %v158_v36, 1  ;;  %v270_v46 = vor.u32 %v269_v37, %v268_v28 }
   0xc   :  { %v273_v48 = vrot.slane %v271_v40, 1  ;;  %v237_v49 = vrot.slane %v944_v27, 1  ;;  %v139_v50 = vshrl.u32 %v1065_v33, 16  ;;  %v141_v51 = vshll.u32 %v1065_v33, 16  ;;  %v956_v40 = vld [vmem:[%s1343_s1 + $0x30] sm:$0xff]  }
   0xd   :  { %342 = vrot.lane.b32.xlu1 %v285_v43, %s987_s17  ;;  %v156_v52 = vor.u32 %v155_v44, %v151_v32  ;;  %v146_v53 = vshll.u32 %v946_v38, 16  ;;  %v295_v54 = vrot.slane %v151_v32, 1  ;;  %v296_v55 = vrot.slane %v153_v35, 2 }
   0xe   :  { %212 = vrot.lane.b32.xlu0 %v137_v39, %s986_s12  ;;  %v275_v57 = vor.u32 %v274_v41, %v273_v48  ;;  %v238_v58 = vsel %vm226_vm0, %v236_v42, %v237_v49  ;;  %v143_v59 = vrot.slane %v141_v51, 1  ;;  %v298_v60 = vshrl.u32 %v944_v27, 16  ;;  %v955_v39 = vld [vmem:[%s1343_s1 + $0x38] sm:$0xff]  }
   0xf   :  { %v161_v61 = vsel %vm113_vm1, %v156_v52, %v160_v45  ;;  %v148_v62 = vrot.slane %v146_v53, 1  ;;  %v297_v63 = vor.u32 %v296_v55, %v295_v54  ;;  %v301_v1 = vrot.slane %v158_v36, 2  ;;  %v1150_v45 = vld [vmem:[%s1342_s0 + $0x54] sm:$0xff]   ;;  %870 = vmatprep.subr.bf16.mxu0 %v955_v39  ;;  %v1160_v54 = vld [vmem:[%s1342_s0 + $0x5c] ss:$0 sps:$4 sm:$0x33]   ;;  %917 = vmatprep.subr.bf16.mxu1 %v955_v39 }
  0x10   :  { %v276_v5 = vsel %vm267_vm2, %v270_v46, %v275_v57  ;;  %v144_v6 = vor.u32 %v143_v59, %v139_v50  ;;  %v300_v7 = vrot.slane %v298_v60, 1  ;;  %v233_v8 = vrot.slane %v1065_v33, 1  ;;  %871 = vmatpush3.bf16.msra.mxu0 %v955_v39  ;;  %v957_v55 = vld [vmem:[%s1343_s1 + $0x28] sm:$0xff]   ;;  %925 = vmatpush3.bf16.msra.mxu1 %v955_v39 }
  0x11   :  { %216 = vrot.lane.b32.xlu1 %v161_v61, %s986_s12  ;;  %v234_v9 = vrot.slane %v946_v38, 1  ;;  %v175_v10 = vshrl.u32 %v1078_v47, 16  ;;  %v177_v11 = vshll.u32 %v1078_v47, 16  ;;  %v182_v12 = vshll.u32 %v1087_v56, 16  ;;  %872 = vmatprep.subr.bf16.mxu0 %v956_v40 }
  0x12   :  { %340 = vrot.lane.b32.xlu0 %v276_v5, %s987_s17  ;;  %v149_v13 = vsel %vm113_vm1, %v144_v6, %v148_v62  ;;  %v302_v14 = vor.u32 %v301_v1, %v300_v7  ;;  %v286_v15 = vrot.slane %v139_v50, 1  ;;  %v287_v16 = vrot.slane %v141_v51, 2  ;;  %918 = vmatprep.subr.bf16.mxu1 %v956_v40  ;;  %v958_v6 = vld [vmem:[%s1343_s1 + $0x20] sm:$0xff]  }
  0x13   :  { %v235_v19 = vsel %vm226_vm0, %v233_v8, %v234_v9  ;;  %v179_v20 = vrot.slane %v177_v11, 1  ;;  %v184_v21 = vrot.slane %v182_v12, 1  ;;  %v289_v22 = vshrl.u32 %v946_v38, 16 }
  0x14   :  { %v303_v23 = vsel %vm267_vm2, %v297_v63, %v302_v14  ;;  %v288_v25 = vor.u32 %v287_v16, %v286_v15  ;;  %v292_v26 = vrot.slane %v146_v53, 2  ;;  %v187_v27 = vshrl.u32 %v1094_v2, 16  ;;  %873 = vmatpush3.bf16.msra.mxu0 %v956_v40  ;;  %926 = vmatpush3.bf16.msra.mxu1 %v956_v40 }
  0x15   :  { %257 = vrot.lane.b32.xlu1 %v238_v58, %s985_s29  ;;  %v180_v28 = vor.u32 %v179_v20, %v175_v10  ;;  %v291_v29 = vrot.slane %v289_v22, 1  ;;  %v189_v30 = vshll.u32 %v1094_v2, 16  ;;  %v194_v31 = vshll.u32 %v1099_v3, 16  ;;  %874 = vmatprep.subr.bf16.mxu0 %v957_v55 }
  0x16   :  { %214 = vrot.lane.b32.xlu0 %v149_v13, %s986_s12  ;;  %v163_v32 = vshrl.u32 %v1112_v17, 16  ;;  %v165_v34 = vshll.u32 %v1112_v17, 16  ;;  %v170_v35 = vshll.u32 %v1117_v18, 16  ;;  %v307_v36 = vshrl.u32 %v1117_v18, 16  ;;  %919 = vmatprep.subr.bf16.mxu1 %v957_v55 }
  0x17   :  { %v293_v37 = vor.u32 %v292_v26, %v291_v29  ;;  %v191_v38 = vrot.slane %v189_v30, 1  ;;  %v196_v41 = vrot.slane %v194_v31, 1  ;;  %v185_v46 = vsel %vm113_vm1, %v180_v28, %v184_v21 }
  0x18   :  { %v167_v42 = vrot.slane %v165_v34, 1  ;;  %v304_v43 = vrot.slane %v163_v32, 1  ;;  %v305_v44 = vrot.slane %v165_v34, 2  ;;  %v309_v49 = vrot.slane %v307_v36, 1  ;;  %875 = vmatpush3.bf16.msra.mxu0 %v957_v55 }
  0x19   :  { %346 = vrot.lane.b32.xlu1 %v303_v23, %s987_s17  ;;  %v192_v48 = vor.u32 %v191_v38, %v187_v27  ;;  %v310_v50 = vrot.slane %v170_v35, 2  ;;  %v294_v51 = vsel %vm267_vm2, %v288_v25, %v293_v37  ;;  %v172_v53 = vrot.slane %v170_v35, 1 }
  0x1a   :  { %255 = vrot.lane.b32.xlu0 %v235_v19, %s985_s29  ;;  %v168_v52 = vor.u32 %v167_v42, %v163_v32  ;;  %v306_v58 = vor.u32 %v305_v44, %v304_v43  ;;  %v239_v61 = vrot.slane %v1112_v17, 1  ;;  %v240_v62 = vrot.slane %v1117_v18, 1 }
  0x1b   :  { %v197_v57 = vsel %vm113_vm1, %v192_v48, %v196_v41  ;;  %v311_v59 = vor.u32 %v310_v50, %v309_v49  ;;  %v201_v63 = vshll.u32 %v1150_v45, 16  ;;  %v245_v1 = vrot.slane %v1094_v2, 1 }
  0x1c   :  { %v173_v60 = vsel %vm113_vm1, %v168_v52, %v172_v53  ;;  %v246_v5 = vrot.slane %v1099_v3, 1  ;;  %v242_v7 = vrot.slane %v1078_v47, 1  ;;  %v243_v8 = vrot.slane %v1087_v56, 1 }
  0x1d   :  { %220 = vrot.lane.b32.xlu1 %v185_v46, %s986_s12  ;;  %v206_v9 = vshll.u32 %v1160_v54, 16  ;;  %v312_v13 = vsel %vm267_vm2, %v306_v58, %v311_v59  ;;  %v199_v14 = vshrl.u32 %v1150_v45, 16  ;;  %v334_v15 = vshrl.u32 %v1160_v54, 16 }
  0x1e   :  { %344 = vrot.lane.b32.xlu0 %v294_v51, %s987_s17  ;;  %v241_v16 = vsel %vm226_vm0, %v239_v61, %v240_v62  ;;  %v203_v18 = vrot.slane %v201_v63, 1  ;;  %v316_v19 = vshrl.u32 %v1087_v56, 16 }
  0x21   :  { %222 = vrot.lane.b32.xlu1 %v197_v57, %s986_s12 }
  0x22   :  { %218 = vrot.lane.b32.xlu0 %v173_v60, %s986_s12 }
  0x23   :  { %11 = vsyncpa [#allocation3], 0  ;;  %v247_v20 = vsel %vm226_vm0, %v245_v1, %v246_v5  ;;  %v248_v21 = vrot.slane %v1150_v45, 1  ;;  %v249_v22 = vrot.slane %v1160_v54, 1  ;;  %876 = vmatprep.subr.bf16.mxu0 %v958_v6  ;;  %v959_v23 = vld [vmem:[%s1343_s1 + $0x18] sm:$0xff]   ;;  %927 = vmatpush3.bf16.msra.mxu1 %v957_v55  ;;  %v244_v25 = vsel %vm226_vm0, %v242_v7, %v243_v8  ;;  %v961_v50 = vld [vmem:[%s1343_s1 + $0x8] sm:$0xff]  }
  0x24   :  { %v208_v26 = vrot.slane %v206_v9, 1  ;;  %v313_v28 = vrot.slane %v175_v10, 1  ;;  %v314_v29 = vrot.slane %v177_v11, 2  ;;  %920 = vmatprep.subr.bf16.mxu1 %v958_v6  ;;  %v331_v32 = vrot.slane %v199_v14, 1  ;;  %877 = vmatpush3.bf16.msra.mxu0 %v958_v6  ;;  %v960_v10 = vld [vmem:[%s1343_s1 + $0x10] sm:$0xff]   ;;  %s990_s16 = smov [#allocation2]  }
  0x25   :  { %348 = vrot.lane.b32.xlu1 %v312_v13, %s987_s17  ;;  %v332_v34 = vrot.slane %v201_v63, 2  ;;  %v336_v35 = vrot.slane %v334_v15, 1  ;;  %v337_v36 = vrot.slane %v206_v9, 2  ;;  %v204_v37 = vor.u32 %v203_v18, %v199_v14  ;;  %878 = vmatprep.subr.bf16.mxu0 %v959_v23  ;;  %s812_s18 = sshll.u32 %s990_s16, 4  ;;  %s813_s18 = int_to_ptr.vmem [resolvable:$true] %s812_s18 }
  0x26   :  { %259 = vrot.lane.b32.xlu0 %v241_v16, %s985_s29  ;;  %v318_v38 = vrot.slane %v316_v19, 1  ;;  %v319_v39 = vrot.slane %v182_v12, 2  ;;  %v325_v40 = vshrl.u32 %v1099_v3, 16  ;;  %v250_v11 = vsel %vm226_vm0, %v248_v21, %v249_v22  ;;  %v962_v3 = vld [vmem:[%s1343_s1] sm:$0xff]   ;;  %s963_s19 = scalar_lea.vmem %s813_s18, 64  ;;  %p968_p1 = scmp.lt.s32.totalorder %s813_s18, %s813_s18 }
  0x27   :  { %928 = vmatpush3.bf16.msra.mxu1 %v958_v6  ;;  %v315_v41 = vor.u32 %v314_v29, %v313_v28  ;;  %v333_v42 = vor.u32 %v332_v34, %v331_v32  ;;  %v338_v56 = vor.u32 %v337_v36, %v336_v35  ;;  %v322_v12 = vrot.slane %v187_v27, 1  ;;  %p964_p0 = scmp.ne.s32.totalorder %s813_s18, %s963_s19  ;;  %p969_p2 = scmp.lt.s32.totalorder %s963_s19, %s963_s19 }
  0x28   :  { %921 = vmatprep.subr.bf16.mxu1 %v959_v23  ;;  %v323_v43 = vrot.slane %v189_v30, 2  ;;  %v209_v44 = vsel %vm113_vm1, %v204_v37, %v208_v26  ;;  %v320_v46 = vor.u32 %v319_v39, %v318_v38  ;;  %v327_v48 = vrot.slane %v325_v40, 1  ;;  %879 = vmatpush3.bf16.msra.mxu0 %v959_v23 }
  0x29   :  { %263 = vrot.lane.b32.xlu1 %v247_v20, %s985_s29  ;;  %v328_v49 = vrot.slane %v194_v31, 2  ;;  %880 = vmatprep.subr.bf16.mxu0 %v960_v10  ;;  %v339_v27 = vsel %vm267_vm2, %v333_v42, %v338_v56  ;;  %vm356_vm3 = vcmask 261120   ;;  %vm373_vm4 = vcmask 523264   ;;  %p970_p3 = por %p969_p2, %p968_p1 }
  0x2a   :  { %261 = vrot.lane.b32.xlu0 %v244_v25, %s985_s29  ;;  %v321_v30 = vsel %vm267_vm2, %v315_v41, %v320_v46  ;;  %v324_v51 = vor.u32 %v323_v43, %v322_v12  ;;  %vm390_vm5 = vcmask 785408   ;;  %v988_v56 = vmov 0.0   ;;  %v693_v12 = vld [vmem:[%s1346_s4 + $0x18] sm:$0xff]  ;;  %v692_v43 = vld [vmem:[%s1346_s4 + $0x10] sm:$0xff]  ;;  %v690_v46 = vld [vmem:[%s1346_s4] sm:$0xff] }
  0x2b   :  { %929 = vmatpush3.bf16.msra.mxu1 %v959_v23  ;;  %v329_v52 = vor.u32 %v328_v49, %v327_v48  ;;  %vm989_vm6 = vmmov 0   ;;  %vm594_vm7 = vcmask 392192   ;;  %vm712_vm8 = vcmask 1041409   ;;  %p971_p4 = pnand %p970_p3, %p964_p0 }
  0x2c   :  { %922 = vmatprep.subr.bf16.mxu1 %v960_v10  ;;  %881 = vmatpush3.bf16.msra.mxu0 %v960_v10  ;;  %vm715_vm9 = vcmask 1042434   ;;  %vm718_vm10 = vcmask 1043459   ;;  %vm721_vm11 = vcmask 1044484   ;;  %vm724_vm12 = vcmask 1045509  }
  0x2d   :  { %265 = vrot.lane.b32.xlu1 %v250_v11, %s985_s29  ;;  %882 = vmatprep.subr.bf16.mxu0 %v961_v50  ;;  %v330_v31 = vsel %vm267_vm2, %v324_v51, %v329_v52  ;;  %vm727_vm13 = vcmask 1046534   ;;  %vm730_vm14 = vcmask 1047559  }
  0x2e   :  { %224 = vrot.lane.b32.xlu0 %v209_v44, %s986_s12  ;;  %v691_v44 = vld [vmem:[%s1346_s4 + $0x8] sm:$0xff] }
  0x2f   :  { %930 = vmatpush3.bf16.msra.mxu1 %v960_v10 }
  0x30   :  { %923 = vmatprep.subr.bf16.mxu1 %v961_v50  ;;  %883 = vmatpush3.bf16.msra.mxu0 %v961_v50 }
  0x31   :  { %354 = vrot.lane.b32.xlu1 %v339_v27, %s987_s17  ;;  %884 = vmatprep.subr.bf16.mxu0 %v962_v3  ;;  %v1283_v27 = vld [vmem:[%s1344_s2 + $0x8] sm:$0xff] }
  0x32   :  { %350 = vrot.lane.b32.xlu0 %v321_v30, %s987_s17  ;;  %v1288_v30 = vld [vmem:[%s1344_s2] sm:$0xff] }
  0x33   :  { %931 = vmatpush3.bf16.msra.mxu1 %v961_v50 }
  0x34   :  { %924 = vmatprep.subr.bf16.mxu1 %v962_v3  ;;  %885 = vmatpush3.bf16.msra.mxu0 %v962_v3 }
  0x36   :  { %352 = vrot.lane.b32.xlu0 %v330_v31, %s987_s17 }
  0x37   :  { %932 = vmatpush3.bf16.msra.mxu1 %v962_v3 }
  0x38   :  { %902 = vmatprep.subr.mxu1 %v988_v56 }
  0x77   :  { %v252_v53 = vpop.permute.xlu1 %251 }
  0x7b   :  { %v254_v54 = vpop.permute.xlu1 %253 }
  0x7c   :  { %v211_v55 = vpop.permute.xlu0 %210 }
  0x7d   :  { %v358_v59 = vsel %vm356_vm3, %v1029_v0, %v211_v55 }
  0x7e   :  { %v375_v1 = vsel %vm373_vm4, %v358_v59, %v252_v53 }
  0x7f   :  { %v343_v57 = vpop.permute.xlu1 %342 }
  0x80   :  { %v213_v58 = vpop.permute.xlu0 %212 }
  0x81   :  { %v360_v60 = vsel %vm356_vm3, %v1038_v4, %v213_v58 }
  0x82   :  { %v377_v62 = vsel %vm373_vm4, %v360_v60, %v254_v54 }
  0x83   :  { %v217_v61 = vpop.permute.xlu1 %216  ;;  %v395_v6 = vsel %vm390_vm5, %v377_v62, %v343_v57 }
  0x84   :  { %v341_v63 = vpop.permute.xlu0 %340  ;;  %v364_v4 = vsel %vm356_vm3, %v1054_v24, %v217_v61 }
  0x85   :  { %v392_v5 = vsel %vm390_vm5, %v375_v1, %v341_v63 }
  0x86   :  { %886 = vmatprep.mubr.bf16.mxu0 %v392_v5 }
  0x87   :  { %887 = vmatmul.mubr.bf16.vlgmr.msra.gmra.mxu0 %v395_v6  ;;  %v258_v7 = vpop.permute.xlu1 %257 }
  0x88   :  { %v215_v8 = vpop.permute.xlu0 %214  ;;  %v381_v13 = vsel %vm373_vm4, %v364_v4, %v258_v7 }
  0x89   :  { %v362_v14 = vsel %vm356_vm3, %v1065_v33, %v215_v8 }
  0x8b   :  { %v347_v0 = vpop.permute.xlu1 %346 }
  0x8c   :  { %v256_v9 = vpop.permute.xlu0 %255  ;;  %v401_v20 = vsel %vm390_vm5, %v381_v13, %v347_v0 }
  0x8d   :  { %v379_v16 = vsel %vm373_vm4, %v362_v14, %v256_v9 }
  0x8f   :  { %v221_v15 = vpop.permute.xlu1 %220 }
  0x90   :  { %v345_v18 = vpop.permute.xlu0 %344  ;;  %v368_v35 = vsel %vm356_vm3, %v1078_v47, %v221_v15 }
  0x91   :  { %v398_v19 = vsel %vm390_vm5, %v379_v16, %v345_v18 }
  0x92   :  { %890 = vmatprep.mubr.bf16.mxu0 %v398_v19 }
  0x93   :  { %891 = vmatmul.mubr.bf16.gmra.mxu0 %v401_v20  ;;  %v223_v21 = vpop.permute.xlu1 %222 }
  0x94   :  { %v219_v22 = vpop.permute.xlu0 %218  ;;  %v370_v39 = vsel %vm356_vm3, %v1094_v2, %v223_v21  ;;  %v694_v2 = vld [vmem:[%s1346_s4 + $0x20] sm:$0xff] }
  0x95   :  { %v366_v24 = vsel %vm356_vm3, %v1112_v17, %v219_v22 }
  0x97   :  { %v349_v23 = vpop.permute.xlu1 %348 }
  0x98   :  { %v260_v25 = vpop.permute.xlu0 %259 }
  0x99   :  { %v383_v26 = vsel %vm373_vm4, %v366_v24, %v260_v25 }
  0x9a   :  { %v404_v33 = vsel %vm390_vm5, %v383_v26, %v349_v23 }
  0x9b   :  { %894 = vmatprep.mubr.bf16.mxu0 %v404_v33  ;;  %v264_v28 = vpop.permute.xlu1 %263 }
  0x9c   :  { %v262_v29 = vpop.permute.xlu0 %261  ;;  %v387_v10 = vsel %vm373_vm4, %v370_v39, %v264_v28 }
  0x9d   :  { %v385_v36 = vsel %vm373_vm4, %v368_v35, %v262_v29 }
  0x9f   :  { %v266_v34 = vpop.permute.xlu1 %265 }
  0xa0   :  { %v225_v32 = vpop.permute.xlu0 %224 }
  0xa1   :  { %v372_v17 = vsel %vm356_vm3, %v1150_v45, %v225_v32  ;;  %v695_v45 = vld [vmem:[%s1346_s4 + $0x28] sm:$0xff] }
  0xa2   :  { %v389_v47 = vsel %vm373_vm4, %v372_v17, %v266_v34 }
  0xa3   :  { %v355_v40 = vpop.permute.xlu1 %354 }
  0xa4   :  { %v351_v37 = vpop.permute.xlu0 %350  ;;  %v413_v42 = vsel %vm390_vm5, %v389_v47, %v355_v40 }
  0xa5   :  { %v407_v38 = vsel %vm390_vm5, %v385_v36, %v351_v37 }
  0xa6   :  { %895 = vmatmul.mubr.bf16.gmra.mxu0 %v407_v38 }
  0xa8   :  { %v353_v11 = vpop.permute.xlu0 %352 }
  0xa9   :  { %v410_v41 = vsel %vm390_vm5, %v387_v10, %v353_v11 }
  0xaa   :  { %898 = vmatprep.mubr.bf16.mxu1 %v410_v41 }
  0xab   :  { %899 = vmatmul.mubr.bf16.vlgmr.msra.gmra.mxu1 %v413_v42 }
  0xac   :  { %903 = vmatpush3.msra.mxu1 %v695_v45  ;;  %914 = vmatprep.mubr.msk.f32.mxu1 %vm989_vm6, %v988_v56 }
  0xad   :  { %904 = vmatprep.subr.mxu1 %v988_v56 }
  0xae   :  { %905 = vmatpush3.msra.mxu1 %v694_v2 }
  0xaf   :  { %906 = vmatprep.subr.mxu1 %v988_v56 }
  0xb0   :  { %907 = vmatpush3.msra.mxu1 %v693_v12 }
  0xb1   :  { %908 = vmatprep.subr.mxu1 %v988_v56 }
  0xb2   :  { %909 = vmatpush3.msra.mxu1 %v692_v43 }
  0xb3   :  { %910 = vmatprep.subr.mxu1 %v988_v56 }
  0xb4   :  { %911 = vmatpush3.msra.mxu1 %v691_v44 }
  0xb5   :  { %912 = vmatprep.subr.mxu1 %v988_v56 }
  0xb6   :  { %913 = vmatpush3.msra.mxu1 %v690_v46 }
 0x147   :  { %v888_v48 = vpop.f32.mrf.mxu0 }
 0x148   :  { %v580_v3 = vadd.f32 %v888_v48, %v1288_v30 }
 0x149   :  { %v513_v49 = vpop.f32.mrf.mxu0 }
 0x14a   :  { %v604_v57 = vsel %vm594_vm7, %v580_v3, -inf  ;;  %v578_v58 = vadd.f32 %v1288_v30, %v513_v49 }
 0x14b   :  { %v889_v50 = vpop.f32.mrf.mxu0 }
 0x14c   :  { %v581_v51 = vadd.f32 %v889_v50, %v1283_v27  ;;  %v595_v6 = vsel %vm594_vm7, %v578_v58, -inf }
 0x14d   :  { %v516_v52 = vpop.f32.mrf.mxu0 }
 0x14e   :  { %v605_v53 = vsel %vm594_vm7, %v581_v51, -inf  ;;  %v579_v54 = vadd.f32 %v1283_v27, %v516_v52  ;;  %v1318_v51 = vld [vmem:[%s1345_s3] ss:$0 sm:$0xff] }
 0x14f   :  { %v606_v59 = vmax.f32 %v604_v57, %v605_v53 }
 0x150   :  { %v596_v62 = vsel %vm594_vm7, %v579_v54, -inf }
 0x151   :  { %v607_v0 = vrot.slane %v606_v59, 4  ;;  %v597_v4 = vmax.f32 %v595_v6, %v596_v62 }
 0x153   :  { %v892_v31 = vpop.f32.mrf.mxu0  ;;  %v608_v18 = vmax.f32 %v606_v59, %v607_v0  ;;  %v598_v19 = vrot.slane %v597_v4, 4 }
 0x154   :  { %v584_v60 = vadd.f32 %v892_v31, %v1288_v30 }
 0x155   :  { %v529_v55 = vpop.f32.mrf.mxu0  ;;  %v609_v23 = vrot.slane %v608_v18, 2  ;;  %v599_v24 = vmax.f32 %v597_v4, %v598_v19 }
 0x156   :  { %v582_v63 = vadd.f32 %v1288_v30, %v529_v55  ;;  %v622_v9 = vsel %vm594_vm7, %v584_v60, -inf }
 0x157   :  { %v893_v61 = vpop.f32.mrf.mxu0  ;;  %v610_v28 = vmax.f32 %v608_v18, %v609_v23  ;;  %v600_v29 = vrot.slane %v599_v24, 2 }
 0x158   :  { %v585_v1 = vadd.f32 %v893_v61, %v1283_v27  ;;  %v613_v13 = vsel %vm594_vm7, %v582_v63, -inf }
 0x159   :  { %v532_v5 = vpop.f32.mrf.mxu0  ;;  %v611_v38 = vrot.slane %v610_v28, 1  ;;  %v601_v17 = vmax.f32 %v599_v24, %v600_v29 }
 0x15a   :  { %v623_v7 = vsel %vm594_vm7, %v585_v1, -inf  ;;  %v583_v8 = vadd.f32 %v1283_v27, %v532_v5 }
 0x15b   :  { %v624_v14 = vmax.f32 %v622_v9, %v623_v7  ;;  %v612_v44 = vmax.f32 %v610_v28, %v611_v38  ;;  %v602_v46 = vrot.slane %v601_v17, 1 }
 0x15c   :  { %v614_v15 = vsel %vm594_vm7, %v583_v8, -inf }
 0x15d   :  { %v615_v16 = vmax.f32 %v613_v13, %v614_v15  ;;  %v625_v21 = vrot.slane %v624_v14, 4  ;;  %v675_v63 = vadd.f32 %v1318_v51, %v612_v44  ;;  %v603_v1 = vmax.f32 %v601_v17, %v602_v46 }
 0x15f   :  { %v616_v20 = vrot.slane %v615_v16, 4  ;;  %v626_v25 = vmax.f32 %v624_v14, %v625_v21  ;;  %v674_v19 = vadd.f32 %v1318_v51, %v603_v1 }
 0x161   :  { %v617_v22 = vmax.f32 %v615_v16, %v616_v20  ;;  %v627_v32 = vrot.slane %v626_v25, 2 }
 0x163   :  { %v618_v26 = vrot.slane %v617_v22, 2  ;;  %v628_v11 = vmax.f32 %v626_v25, %v627_v32 }
 0x165   :  { %v619_v34 = vmax.f32 %v617_v22, %v618_v26  ;;  %v629_v54 = vrot.slane %v628_v11, 1 }
 0x166   :  { %v896_v33 = vpop.f32.mrf.mxu0 }
 0x167   :  { %v588_v36 = vadd.f32 %v896_v33, %v1288_v30  ;;  %v620_v41 = vrot.slane %v619_v34, 1  ;;  %v630_v13 = vmax.f32 %v628_v11, %v629_v54 }
 0x168   :  { %v545_v35 = vpop.f32.mrf.mxu0 }
 0x169   :  { %v586_v39 = vadd.f32 %v1288_v30, %v545_v35  ;;  %v640_v42 = vsel %vm594_vm7, %v588_v36, -inf  ;;  %v621_v55 = vmax.f32 %v619_v34, %v620_v41  ;;  %v677_v25 = vadd.f32 %v1318_v51, %v630_v13 }
 0x16a   :  { %v897_v37 = vpop.f32.mrf.mxu0  ;;  %v682_v34 = vmax.f32 %v674_v19, 0.0 }
 0x16b   :  { %v589_v40 = vadd.f32 %v897_v37, %v1283_v27  ;;  %v900_v10 = vpop.f32.mrf.mxu1  ;;  %v631_v48 = vsel %vm594_vm7, %v586_v39, -inf  ;;  %v676_v0 = vadd.f32 %v1318_v51, %v621_v55  ;;  %v685_v17 = vmax.f32 %v677_v25, 0.0 }
 0x16c   :  { %v548_v47 = vpop.f32.mrf.mxu0  ;;  %v592_v45 = vadd.f32 %v900_v10, %v1288_v30 }
 0x16d   :  { %v641_v56 = vsel %vm594_vm7, %v589_v40, -inf  ;;  %v587_v2 = vadd.f32 %v1283_v27, %v548_v47  ;;  %v561_v12 = vpop.f32.mrf.mxu1  ;;  %v684_v22 = vmax.f32 %v676_v0, 0.0 }
 0x16e   :  { %v642_v43 = vmax.f32 %v640_v42, %v641_v56  ;;  %v590_v31 = vadd.f32 %v1288_v30, %v561_v12  ;;  %v658_v57 = vsel %vm594_vm7, %v592_v45, -inf }
 0x16f   :  { %v632_v49 = vsel %vm594_vm7, %v587_v2, -inf  ;;  %v901_v50 = vpop.f32.mrf.mxu1  ;;  %v714_v36 = vrot.slane %v684_v22, 6  ;;  %v717_v2 = vrot.slane %v685_v17, 5 }
 0x170   :  { %v643_v52 = vrot.slane %v642_v43, 4  ;;  %v633_v3 = vmax.f32 %v631_v48, %v632_v49  ;;  %v593_v53 = vadd.f32 %v901_v50, %v1283_v27  ;;  %v649_v30 = vsel %vm594_vm7, %v590_v31, -inf }
 0x171   :  { %v564_v58 = vpop.f32.mrf.mxu1 }
 0x172   :  { %v644_v59 = vmax.f32 %v642_v43, %v643_v52  ;;  %v634_v60 = vrot.slane %v633_v3, 4  ;;  %v659_v61 = vsel %vm594_vm7, %v593_v53, -inf  ;;  %v591_v62 = vadd.f32 %v1283_v27, %v564_v58 }
 0x173   :  { %v660_v5 = vmax.f32 %v658_v57, %v659_v61  ;;  %v683_v27 = vmax.f32 %v675_v63, 0.0  ;;  %v845_v57 = vld [vmem:[%s1347_s5] ss:$0 sm:$0xff] }
 0x174   :  { %v645_v6 = vrot.slane %v644_v59, 2  ;;  %v635_v7 = vmax.f32 %v633_v3, %v634_v60  ;;  %v650_v8 = vsel %vm594_vm7, %v591_v62, -inf }
 0x175   :  { %v661_v4 = vrot.slane %v660_v5, 4  ;;  %v651_v9 = vmax.f32 %v649_v30, %v650_v8  ;;  %v711_v32 = vrot.slane %v683_v27, 7 }
 0x176   :  { %v646_v14 = vmax.f32 %v644_v59, %v645_v6  ;;  %v636_v15 = vrot.slane %v635_v7, 2 }
 0x177   :  { %v662_v16 = vmax.f32 %v660_v5, %v661_v4  ;;  %v652_v18 = vrot.slane %v651_v9, 4  ;;  %v713_v41 = vsel %vm712_vm8, %v711_v32, %v682_v34 }
 0x178   :  { %v647_v20 = vrot.slane %v646_v14, 1  ;;  %v637_v21 = vmax.f32 %v635_v7, %v636_v15  ;;  %v716_v45 = vsel %vm715_vm9, %v714_v36, %v713_v41 }
 0x179   :  { %v663_v23 = vrot.slane %v662_v16, 2  ;;  %v653_v24 = vmax.f32 %v651_v9, %v652_v18  ;;  %v719_v48 = vsel %vm718_vm10, %v717_v2, %v716_v45 }
 0x17a   :  { %v648_v26 = vmax.f32 %v646_v14, %v647_v20  ;;  %v638_v33 = vrot.slane %v637_v21, 1 }
 0x17b   :  { %v664_v28 = vmax.f32 %v662_v16, %v663_v23  ;;  %v654_v29 = vrot.slane %v653_v24, 2 }
 0x17c   :  { %v639_v35 = vmax.f32 %v637_v21, %v638_v33  ;;  %v679_v39 = vadd.f32 %v1318_v51, %v648_v26 }
 0x17d   :  { %v665_v37 = vrot.slane %v664_v28, 1  ;;  %v655_v38 = vmax.f32 %v653_v24, %v654_v29 }
 0x17e   :  { %v678_v40 = vadd.f32 %v1318_v51, %v639_v35  ;;  %v687_v12 = vmax.f32 %v679_v39, 0.0 }
 0x17f   :  { %v666_v10 = vmax.f32 %v664_v28, %v665_v37  ;;  %v656_v11 = vrot.slane %v655_v38, 1 }
 0x180   :  { %v686_v47 = vmax.f32 %v678_v40, 0.0  ;;  %v723_v52 = vrot.slane %v687_v12, 3 }
 0x181   :  { %v657_v42 = vmax.f32 %v655_v38, %v656_v11  ;;  %v681_v56 = vadd.f32 %v1318_v51, %v666_v10 }
 0x182   :  { %v720_v43 = vrot.slane %v686_v47, 4 }
 0x183   :  { %v680_v44 = vadd.f32 %v1318_v51, %v657_v42  ;;  %v689_v46 = vmax.f32 %v681_v56, 0.0 }
 0x184   :  { %v722_v50 = vsel %vm721_vm11, %v720_v43, %v719_v48 }
 0x185   :  { %v688_v49 = vmax.f32 %v680_v44, 0.0  ;;  %v725_v31 = vsel %vm724_vm12, %v723_v52, %v722_v50  ;;  %v729_v53 = vrot.slane %v689_v46, 1 }
 0x187   :  { %v726_v3 = vrot.slane %v688_v49, 2 }
 0x189   :  { %v728_v54 = vsel %vm727_vm13, %v726_v3, %v725_v31 }
 0x18a   :  { %v731_v55 = vsel %vm730_vm14, %v729_v53, %v728_v54 }
 0x18b   :  { %915 = vmatmul.mubr.msk.f32.vlgmr.msra.gmra.mxu1 %vm594_vm7, %v731_v55 }
 0x24b   :  { %v800_v51 = vpop.f32.mrf.mxu1 }
 0x24c   :  { %v801_v58 = vadd.f32 %v845_v57, %v800_v51 }
 0x24d   :  { %v916_v59 = vpop.f32.mrf.mxu1 }
 0x24e   :  { %v804_v60 = vpack.c.bf16 %v801_v58, %v801_v58 }
 0x250   :  { %805 = vst [vmem:[#allocation2] sm:$0xf] %v804_v60 }
 0x251   :  { %974 = shalt.err (!%p971_p4)
}
 0x252   :  { %815 = dma.vmem_to_hbm [thread:$0]  %s813_s18, 64, %s1348_s6, [#allocation3]  }
 0x253   :  { %983 = dma.done.wait [#allocation3], 64  }
 0x254   :  { %984 = vsyncadd [#allocation3], 4294967232 }
 0x255   :  { %819 = vsyncpa [#allocation3], 1 }

</bundles_post_ra>
